<compile_context>
chip_gen: v7x
topology: tpu7x:2x2x1
jax: 0.10.0
libtpu: 0.0.40
codegen_flags: <defaults>
</compile_context>

<pallas_src>
import jax
import jax.numpy as jnp
from jax import lax
from jax.experimental import pallas as pl
from jax.experimental.pallas import tpu as pltpu


def _round_up(x, m):
    return ((x + m - 1) // m) * m


def _sigmoid_eup(a):
    # sigmoid(x) == 0.5 * (tanh(x / 2) + 1): a single EUP transcendental per
    # element instead of exp + divide (the divide would land on the VALU).
    return 0.5 * (jnp.tanh(0.5 * a) + 1.0)


def _decoder_gcn_kernel_fused(z1_ref, z2t_ref, a_ref):
    """Single-K-tile path: one NN-contraction dot + fused sigmoid."""
    a = lax.dot_general(
        z1_ref[...],
        z2t_ref[...],
        dimension_numbers=(((1,), (0,)), ((), ())),  # (tm, K) @ (K, tn)
        preferred_element_type=jnp.float32,
    )
    a_ref[...] = _sigmoid_eup(a).astype(a_ref.dtype)


def _decoder_gcn_kernel_ktiled(z1_ref, z2t_ref, a_ref, acc_ref):
    """Last-resort K-tiled path (very large D): f32 VMEM scratch accumulator.

    Correct only because the output index_map ignores k and k is the
    innermost ("arbitrary") grid axis; accumulation stays f32 in scratch so
    out_dtype may be bf16 without losing precision.
    """
    k = pl.program_id(2)

    @pl.when(k == 0)
    def _():
        acc_ref[...] = jnp.zeros_like(acc_ref)

    acc_ref[...] += lax.dot_general(
        z1_ref[...],
        z2t_ref[...],
        dimension_numbers=(((1,), (0,)), ((), ())),
        preferred_element_type=jnp.float32,
    )

    @pl.when(k == pl.num_programs(2) - 1)
    def _():
        a_ref[...] = _sigmoid_eup(acc_ref[...]).astype(a_ref.dtype)


def _vmem_budget_bytes():
    """Generation-aware scoped-VMEM budget."""
    try:
        cap = int(pltpu.get_tpu_info().vmem_capacity_bytes)
    except Exception:
        cap = 64 * 1024 * 1024  # conservative (v7x-sized) fallback
    # ~48 MiB on v7x (64 MiB/TC), up to ~96-100 MiB on v5e/v6e (128 MiB).
    return int(min(0.75 * cap, 100 * 1024 * 1024))


def decoder_gcn(z1, z2, *, tm=512, tn=1024, tk=2048,
                use_bf16_inputs=False, out_dtype=jnp.float32):
    """A = sigmoid(z1 @ z2.T) via a Pallas tiled-matmul kernel.

    use_bf16_inputs / bf16 out_dtype are opt-in (they change numerics
    slightly vs torch.sigmoid(torch.mm(f32))).
    """
    M, D = z1.shape
    N, D2 = z2.shape
    assert D == D2, "latent dims of z1 and z2 must match"

    in_dtype = jnp.bfloat16 if use_bf16_inputs else jnp.float32
    in_bytes = jnp.dtype(in_dtype).itemsize
    out_bytes = jnp.dtype(out_dtype).itemsize

    # Align requested tile sizes to hardware granularity.
    tm = _round_up(max(tm, 8), 8)
    tn = _round_up(max(tn, 128), 128)
    tk = _round_up(max(tk, 128), 128)

    budget = _vmem_budget_bytes()

    d128 = _round_up(D, 128)
    fused = d128 <= tk

    # Clamp tiles to the problem size (never exceed what one block needs).
    tm_eff = min(tm, _round_up(M, 8))
    tn_eff = min(tn, _round_up(N, 128))

    if fused:
        tk_eff = d_total = d128
        k_blocks = 1
    else:
        tk_eff = min(tk, d128)
        d_total = _round_up(D, tk_eff)
        k_blocks = d_total // tk_eff

    def est_bytes(tm_, tn_):
        # Double-buffered inputs + output (factor 2 already included here).
        b = 2 * in_bytes * (tm_ * tk_eff + tk_eff * tn_) + 2 * out_bytes * tm_ * tn_
        if not fused:
            b += 4 * tm_ * tn_  # f32 accumulator scratch (single-buffered)
        return b

    # Shrink tiles until the working set fits the VMEM budget.
    while est_bytes(tm_eff, tn_eff) > budget and (tm_eff > 8 or tn_eff > 128):
        if tn_eff >= tm_eff and tn_eff > 128:
            tn_eff = _round_up(max(tn_eff // 2, 128), 128)
        elif tm_eff > 8:
            tm_eff = _round_up(max(tm_eff // 2, 8), 8)
        else:
            break

    grid_i = pl.cdiv(M, tm_eff)
    grid_j = pl.cdiv(N, tn_eff)

    # v7x has 2 TensorCores fed by sharding "parallel" grid axes: make sure at
    # least one parallel axis has >= 2 blocks when the problem allows it.
    if grid_i * grid_j == 1:
        if N > 128:
            tn_eff = max(128, _round_up(pl.cdiv(N, 2), 128))
            grid_j = pl.cdiv(N, tn_eff)
        elif M > 8:
            tm_eff = max(8, _round_up(pl.cdiv(M, 2), 8))
            grid_i = pl.cdiv(M, tm_eff)

    # Cast once in the wrapper; transpose z2 once to (D, N) so the kernel
    # contraction is NN (no in-kernel transpose). Only the contraction dim D
    # is zero-padded -- zeros along K do not change the dot product.
    z1p = z1.astype(in_dtype)
    z2t = jnp.transpose(z2.astype(in_dtype))  # (D, N)
    if d_total != D:
        z1p = jnp.pad(z1p, ((0, 0), (0, d_total - D)))
        z2t = jnp.pad(z2t, ((0, d_total - D), (0, 0)))

    cost = pl.CostEstimate(
        flops=2 * M * N * d_total,
        transcendentals=M * N,
        bytes_accessed=in_bytes * (M + N) * d_total + out_bytes * M * N,
    )

    est = est_bytes(tm_eff, tn_eff)
    vmem_limit = int(min(max(int(1.25 * est), 32 * 1024 * 1024), budget))

    if k_blocks == 1:
        out = pl.pallas_call(
            _decoder_gcn_kernel_fused,
            out_shape=jax.ShapeDtypeStruct((M, N), out_dtype),
            grid_spec=pltpu.PrefetchScalarGridSpec(
                num_scalar_prefetch=0,
                grid=(grid_i, grid_j),
                in_specs=[
                    # z1 tile constant across j -> no re-DMA in the inner loop.
                    pl.BlockSpec((tm_eff, d_total), lambda i, j: (i, 0)),
                    pl.BlockSpec((d_total, tn_eff), lambda i, j: (0, j)),
                ],
                out_specs=pl.BlockSpec((tm_eff, tn_eff), lambda i, j: (i, j)),
            ),
            compiler_params=pltpu.CompilerParams(
                dimension_semantics=("parallel", "parallel"),
                vmem_limit_bytes=vmem_limit,
            ),
            cost_estimate=cost,
        )(z1p, z2t)
    else:
        # Last-resort path for very large D (> tk). Kept out of the default
        # regime: grid-K RMW competes with MXU pops (worst on v5e's single
        # vst slot) and defeats v7x MRB in-place accumulation.
        out = pl.pallas_call(
            _decoder_gcn_kernel_ktiled,
            out_shape=jax.ShapeDtypeStruct((M, N), out_dtype),
            grid_spec=pltpu.PrefetchScalarGridSpec(
                num_scalar_prefetch=0,
                grid=(grid_i, grid_j, k_blocks),
                in_specs=[
                    pl.BlockSpec((tm_eff, tk_eff), lambda i, j, k: (i, k)),
                    pl.BlockSpec((tk_eff, tn_eff), lambda i, j, k: (k, j)),
                ],
                # Output block index ignores k -> resident across reduction.
                out_specs=pl.BlockSpec((tm_eff, tn_eff), lambda i, j, k: (i, j)),
                scratch_shapes=[pltpu.VMEM((tm_eff, tn_eff), jnp.float32)],
            ),
            compiler_params=pltpu.CompilerParams(
                dimension_semantics=("parallel", "parallel", "arbitrary"),
                vmem_limit_bytes=vmem_limit,
            ),
            cost_estimate=cost,
        )(z1p, z2t)

    return out


if __name__ == "__main__":
    key = jax.random.PRNGKey(0)
    k1, k2, k3, k4 = jax.random.split(key, 4)

    # Case 1: typical GAE/GCN decoder shapes -- small latent dim, ragged node
    # counts (exercises the unpadded-M/N fused path with masked edge blocks).
    M, N, D = 200, 120, 16
    z1 = jax.random.normal(k1, (M, D), dtype=jnp.float32)
    z2 = jax.random.normal(k2, (N, D), dtype=jnp.float32)
    A = jax.block_until_ready(decoder_gcn(z1, z2))
    A_ref = jax.nn.sigmoid(z1 @ z2.T)
    assert A.shape == (M, N)
    assert jnp.allclose(A, A_ref, atol=1e-4, rtol=1e-4), "mismatch (case 1)"

    # Case 2: larger latent dim with a forced small tk to exercise the
    # last-resort K-tiled scratch-accumulator path.
    M2, N2, D2 = 256, 384, 256
    z1b = jax.random.normal(k3, (M2, D2), dtype=jnp.float32)
    z2b = jax.random.normal(k4, (N2, D2), dtype=jnp.float32)
    A2 = jax.block_until_ready(decoder_gcn(z1b, z2b, tk=128))
    A2_ref = jax.nn.sigmoid(z1b @ z2b.T)
    assert A2.shape == (M2, N2)
    assert jnp.allclose(A2, A2_ref, atol=1e-4, rtol=1e-4), "mismatch (case 2)"

    # Case 3: opt-in bf16 MXU inputs (f32 accumulate) -- looser tolerance.
    A3 = jax.block_until_ready(decoder_gcn(z1b, z2b, use_bf16_inputs=True))
    assert A3.shape == (M2, N2)
    assert jnp.allclose(A3, A2_ref, atol=5e-2, rtol=5e-2), "mismatch (case 3)"

    print("KERNEL_OK")
</pallas_src>

<mosaic_0001>
module attributes {stable_mosaic.version = 11 : i64} {
  func.func @_decoder_gcn_kernel_fused(%arg0: i32, %arg1: i32, %arg2: memref<104x128xf32, #tpu.memory_space<vmem>>, %arg3: memref<128x128xf32, #tpu.memory_space<vmem>>, %arg4: memref<104x128xf32, #tpu.memory_space<vmem>>) attributes {dimension_semantics = [#tpu.dimension_semantics<parallel>, #tpu.dimension_semantics<parallel>], iteration_bounds = array<i64: 2, 1>, scalar_prefetch = 0 : i64, scratch_operands = 0 : i64, tpu.core_type = #tpu.core_type<tc>, window_params = [{transform_indices = @transform_0, window_bounds = array<i64: 104, 128>}, {transform_indices = @transform_1, window_bounds = array<i64: 128, 128>}, {transform_indices = @transform_2, window_bounds = array<i64: 104, 128>}]} {
    %c0 = arith.constant 0 : index
    %c0_0 = arith.constant 0 : index
    %0 = vector.load %arg2[%c0, %c0_0] : memref<104x128xf32, #tpu.memory_space<vmem>>, vector<104x128xf32>
    %c0_1 = arith.constant 0 : index
    %c0_2 = arith.constant 0 : index
    %1 = vector.load %arg3[%c0_1, %c0_2] : memref<128x128xf32, #tpu.memory_space<vmem>>, vector<128x128xf32>
    %cst = arith.constant dense<0.000000e+00> : vector<104x128xf32>
    %2 = tpu.matmul %0, %1, %cst {dimension_numbers = #tpu.dot_dimension_numbers<[1], [0], [0], [1], [0, 0, 1, 1], [], []>} : vector<104x128xf32>, vector<128x128xf32>, vector<104x128xf32> -> vector<104x128xf32>
    %cst_3 = arith.constant 5.000000e-01 : f32
    %3 = vector.broadcast %cst_3 : f32 to vector<104x128xf32>
    %4 = arith.mulf %3, %2 : vector<104x128xf32>
    %5 = math.tanh %4 : vector<104x128xf32>
    %cst_4 = arith.constant 1.000000e+00 : f32
    %6 = vector.broadcast %cst_4 : f32 to vector<104x128xf32>
    %7 = arith.addf %5, %6 : vector<104x128xf32>
    %cst_5 = arith.constant 5.000000e-01 : f32
    %8 = vector.broadcast %cst_5 : f32 to vector<104x128xf32>
    %9 = arith.mulf %8, %7 : vector<104x128xf32>
    %c0_6 = arith.constant 0 : index
    %c0_7 = arith.constant 0 : index
    %10 = vector.load %arg4[%c0_6, %c0_7] : memref<104x128xf32, #tpu.memory_space<vmem>>, vector<104x128xf32>
    tpu.vector_store %arg4[%c0_6, %c0_7], %9 {strides = array<i32>} : memref<104x128xf32, #tpu.memory_space<vmem>>, vector<104x128xf32>,
    return
  }
  func.func @transform_0(%arg0: i32, %arg1: i32) -> (i32, i32) {
    %c0_i32 = arith.constant 0 : i32
    %c0_i32_0 = arith.constant 0 : i32
    return %arg0, %c0_i32 : i32, i32
  }
  func.func @transform_1(%arg0: i32, %arg1: i32) -> (i32, i32) {
    %c0_i32 = arith.constant 0 : i32
    %c0_i32_0 = arith.constant 0 : i32
    return %c0_i32, %arg1 : i32, i32
  }
  func.func @transform_2(%arg0: i32, %arg1: i32) -> (i32, i32) {
    %c0_i32 = arith.constant 0 : i32
    return %arg0, %arg1 : i32, i32
  }
}

</mosaic_0001>

<bundles_post_ra>
// kernel: tpu_custom_call.1
= control target key start
LH: loop header
LB: loop body
LE: loop exit
PB: predicated region body
PF: predicated region fallthrough
CT: control target
= control target key end

     0   :  { %7 = vsyncpa [#allocation3], 0  ;;  %s1112_s0 = inlined_call_operand.vmem [shape: f32[200,128], index: 0, kind: input, shape index: {}]   ;;  %s1113_s1 = inlined_call_operand.vmem [shape: f32[128,120], index: 1, kind: input, shape index: {}]   ;;  %s1114_s2 = inlined_call_operand.hbm [shape: f32[200,120], index: 2, kind: output, shape index: {}]  }
   0x1   :  { %9 = vsyncpa [#allocation3 + $0x1], 0  ;;  %s874_s9 = smov 0   ;;  %s876_s10 = smov 0  }
   0x2   :  { %s878_s11 = smov 0   ;;  %s880_s12 = smov 0  }
   0x3   :  { %s882_s13 = smov 0   ;;  %s884_s14 = smov 0  }
   0x4 LB: > { %s532_s15 = sadd.s32 4294967295, %s851_s14   ;;  %s533_s16 = sadd.s32 4294967294, %s851_s14   ;;  %s851_s14 = sphi %s884_s14, %s15_s14   ;;  %s847_s13 = sphi %s882_s13, %s1121_s13   ;;  %s843_s12 = sphi %s880_s12, %s1120_s12   ;;  %s839_s11 = sphi %s878_s11, %s1119_s11   ;;  %s835_s10 = sphi %s876_s10, %s1118_s10   ;;  %s831_s9 = sphi %s874_s9, %s1117_s9  }
   0x5   : > { %s27_s17 = sadd.s32 1, %s847_s13  ;;  %s88_s18 = sadd.s32 1, %s839_s11 }
   0x6   : > { %p29_p0 = scmp.ge.s32.totalorder %s27_s17, 2  ;;  %p98_p1 = scmp.ne.s32.totalorder %s839_s11, %s835_s10 }
   0x7   : > { %p99_p2 = scmp.eq.s32.totalorder %s532_s15, 1  ;;  %p104_p3 = scmp.ne.s32.totalorder %s835_s10, %s831_s9 }
   0x8   : > { %s1123_s17 = smov (%p29_p0, %s27_s17), 0  ;;  %p105_p5 = scmp.eq.s32.totalorder %s533_s16, 1 }
   0x9   : > { %p914_p4 = por %p99_p2, %p98_p1  ;;  %s83_s20 = ssub.s32 %s847_s13, %s1123_s17 }
   0xa   : > { %p537_p6 = scmp.ge.s32.totalorder %s851_s14, 1  ;;  %p86_p7 = scmp.eq.s32.totalorder %s83_s20, 0 }
   0xb   : > { %p921_p8 = por %p105_p5, %p104_p3  ;;  %p147_p9 = scmp.lt.s32.totalorder %s851_s14, 3 }
   0xc   : > { %s927_s22 = scalar_select %p86_p7, %s839_s11, %s88_s18  }
   0xd   : > { %p148_p10 = pnand %p537_p6, %p147_p9 }
   0xe   : > { %v213_v0 = vld [vmem:[%s1113_s1] sm:$0xff] (!%p148_p10)  ;;  %v214_v1 = vld [vmem:[%s1113_s1 + $0x8] sm:$0xff] (!%p148_p10)  ;;  %v215_v2 = vld [vmem:[%s1113_s1 + $0x10] sm:$0xff] (!%p148_p10)  ;;  %v853_v3 = vmov (!%p148_p10), 0.0|0.0   ;;  %vm854_vm0 = vmmov (!%p148_p10), 0   ;;  %v855_v6 = vmov (!%p148_p10), 0.0  }
   0xf   : > { %151 = sbr.rel (%p148_p10) target bundleno = 330 (0x14a), region = 28  ;;  %647 = vmatprep.subr.bf16.mxu0 (!%p148_p10), %v853_v3  ;;  %v648_v4 = vpack.c.bf16 (!%p148_p10), %v214_v1, %v213_v0  ;;  %671 = vmatprep.subr.bf16.mxu1 (!%p148_p10), %v853_v3  ;;  %v216_v5 = vld [vmem:[%s1113_s1 + $0x18] sm:$0xff] (!%p148_p10)  ;;  %v217_v8 = vld [vmem:[%s1113_s1 + $0x20] sm:$0xff] (!%p148_p10)  ;;  %v218_v9 = vld [vmem:[%s1113_s1 + $0x28] sm:$0xff] (!%p148_p10)  ;;  %s174_s26 = sand.u32 (!%p148_p10), 1, %s835_s10  }
  0x10   : > { %608 = vmatprep.mubr.msk.f32.mxu0 (!%p148_p10), %vm854_vm0, %v855_v6  ;;  %629 = vmatprep.mubr.msk.f32.mxu1 (!%p148_p10), %vm854_vm0, %v855_v6  ;;  %v651_v7 = vpack.c.bf16 (!%p148_p10), %v216_v5, %v215_v2  ;;  %v654_v10 = vpack.c.bf16 (!%p148_p10), %v218_v9, %v217_v8  ;;  %v219_v11 = vld [vmem:[%s1113_s1 + $0x30] sm:$0xff] (!%p148_p10)  ;;  %v220_v12 = vld [vmem:[%s1113_s1 + $0x38] sm:$0xff] (!%p148_p10)  ;;  %v221_v14 = vld [vmem:[%s1113_s1 + $0x40] sm:$0xff] (!%p148_p10)  ;;  %s964_s25 = smul.u32 (!%p148_p10), 13, %s843_s12  ;;  %s1046_s29 = scalar_lea.sflag (!%p148_p10), [#allocation3], %s174_s26 }
  0x11   : > { %649 = vmatpush3.bf16.msra.mxu0 (!%p148_p10), %v648_v4  ;;  %679 = vmatpush3.bf16.msra.mxu1 (!%p148_p10), %v648_v4  ;;  %v657_v13 = vpack.c.bf16 (!%p148_p10), %v220_v12, %v219_v11  ;;  %v222_v15 = vld [vmem:[%s1113_s1 + $0x48] sm:$0xff] (!%p148_p10)  ;;  %v223_v17 = vld [vmem:[%s1113_s1 + $0x50] sm:$0xff] (!%p148_p10)  ;;  %v224_v18 = vld [vmem:[%s1113_s1 + $0x58] sm:$0xff] (!%p148_p10)  ;;  %s687_s27 = smul.u32 (!%p148_p10), 104, %s174_s26 }
  0x12   : > { %650 = vmatprep.subr.bf16.mxu0 (!%p148_p10), %v853_v3  ;;  %672 = vmatprep.subr.bf16.mxu1 (!%p148_p10), %v853_v3  ;;  %v660_v16 = vpack.c.bf16 (!%p148_p10), %v222_v15, %v221_v14  ;;  %p182_p11 = scmp.lt.s32.totalorder (!%p148_p10), %s964_s25, 24  ;;  %v663_v19 = vpack.c.bf16 (!%p148_p10), %v224_v18, %v223_v17  ;;  %v225_v20 = vld [vmem:[%s1113_s1 + $0x60] sm:$0xff] (!%p148_p10)  ;;  %v226_v21 = vld [vmem:[%s1113_s1 + $0x68] sm:$0xff] (!%p148_p10)  ;;  %v227_v23 = vld [vmem:[%s1113_s1 + $0x70] sm:$0xff] (!%p148_p10) }
  0x13   : > { %v666_v22 = vpack.c.bf16 (!%p148_p10), %v226_v21, %v225_v20  ;;  %v228_v24 = vld [vmem:[%s1113_s1 + $0x78] sm:$0xff] (!%p148_p10)  ;;  %s1029_s28 = scalar_lea.vmem (!%p148_p10), [#allocation2], %s687_s27 }
  0x14   : > { %v669_v25 = vpack.c.bf16 (!%p148_p10), %v228_v24, %v227_v23 }
  0x15   : > { %652 = vmatpush3.bf16.msra.mxu0 (!%p148_p10), %v651_v7  ;;  %680 = vmatpush3.bf16.msra.mxu1 (!%p148_p10), %v651_v7 }
  0x16   : > { %653 = vmatprep.subr.bf16.mxu0 %v853_v3  ;;  %673 = vmatprep.subr.bf16.mxu1 %v853_v3  ;;  %s183_s6 = scalar_select %p182_p11, %s964_s25, 24 }
  0x17   : > { %s433_s30 = ssub.s32 (%p914_p4), 25, %s964_s25 }
  0x18   : > { %s538_s18 = sshll.u32 %s183_s6, 3  ;;  %p434_p12 = scmp.lt.s32.totalorder (%p914_p4), %s433_s30, 13 }
  0x19   : > { %655 = vmatpush3.bf16.msra.mxu0 %v654_v10  ;;  %681 = vmatpush3.bf16.msra.mxu1 %v654_v10  ;;  %s989_s24 = scalar_lea.vmem %s1112_s0, %s538_s18 }
  0x1a   : > { %656 = vmatprep.subr.bf16.mxu0 %v853_v3  ;;  %674 = vmatprep.subr.bf16.mxu1 %v853_v3  ;;  %v200_v26 = vld [vmem:[%s989_s24] sm:$0xff]  ;;  %v207_v27 = vld [vmem:[%s989_s24 + $0x38] sm:$0xff]  ;;  %v201_v28 = vld [vmem:[%s989_s24 + $0x8] sm:$0xff] }
  0x1b   : > { %v208_v29 = vld [vmem:[%s989_s24 + $0x40] sm:$0xff]  ;;  %v202_v30 = vld [vmem:[%s989_s24 + $0x10] sm:$0xff]  ;;  %v209_v31 = vld [vmem:[%s989_s24 + $0x48] sm:$0xff] }
  0x1c   : > { %v203_v32 = vld [vmem:[%s989_s24 + $0x18] sm:$0xff]  ;;  %v210_v33 = vld [vmem:[%s989_s24 + $0x50] sm:$0xff]  ;;  %v204_v34 = vld [vmem:[%s989_s24 + $0x20] sm:$0xff] }
  0x1d   : > { %658 = vmatpush3.bf16.msra.mxu0 %v657_v13  ;;  %682 = vmatpush3.bf16.msra.mxu1 %v657_v13  ;;  %v211_v35 = vld [vmem:[%s989_s24 + $0x58] sm:$0xff]  ;;  %v205_v36 = vld [vmem:[%s989_s24 + $0x28] sm:$0xff]  ;;  %v212_v37 = vld [vmem:[%s989_s24 + $0x60] sm:$0xff] }
  0x1e   : > { %659 = vmatprep.subr.bf16.mxu0 %v853_v3  ;;  %675 = vmatprep.subr.bf16.mxu1 %v853_v3  ;;  %v206_v38 = vld [vmem:[%s989_s24 + $0x30] sm:$0xff] }
  0x21   : > { %661 = vmatpush3.bf16.msra.mxu0 %v660_v16  ;;  %683 = vmatpush3.bf16.msra.mxu1 %v660_v16 }
  0x22   : > { %662 = vmatprep.subr.bf16.mxu0 %v853_v3  ;;  %676 = vmatprep.subr.bf16.mxu1 %v853_v3 }
  0x25   : > { %664 = vmatpush3.bf16.msra.mxu0 %v663_v19  ;;  %684 = vmatpush3.bf16.msra.mxu1 %v663_v19 }
  0x26   : > { %665 = vmatprep.subr.bf16.mxu0 %v853_v3  ;;  %677 = vmatprep.subr.bf16.mxu1 %v853_v3 }
  0x29   : > { %667 = vmatpush3.bf16.msra.mxu0 %v666_v22  ;;  %685 = vmatpush3.bf16.msra.mxu1 %v666_v22 }
  0x2a   : > { %668 = vmatprep.subr.bf16.mxu0 %v853_v3  ;;  %678 = vmatprep.subr.bf16.mxu1 %v853_v3 }
  0x2d   : > { %670 = vmatpush3.bf16.msra.mxu0 %v669_v25  ;;  %686 = vmatpush3.bf16.msra.mxu1 %v669_v25 }
  0x30   : > { %609 = vmatmul.mubr.f32.vlgmr.msra.gmra.mrb[0].mxu0 %v200_v26  ;;  %630 = vmatmul.mubr.f32.vlgmr.msra.gmra.mrb[0].mxu1 %v207_v27 }
  0x31   : > { %611 = vmatprep.mubr.msk.f32.mxu0 %vm854_vm0, %v855_v6  ;;  %632 = vmatprep.mubr.msk.f32.mxu1 %vm854_vm0, %v855_v6 }
  0x34   : > { %612 = vmatmul.mubr.f32.gmra.mrb[2].mxu0 %v201_v28  ;;  %633 = vmatmul.mubr.f32.gmra.mrb[2].mxu1 %v208_v29 }
  0x35   : > { %614 = vmatprep.mubr.msk.f32.mxu0 %vm854_vm0, %v855_v6  ;;  %635 = vmatprep.mubr.msk.f32.mxu1 %vm854_vm0, %v855_v6 }
  0x38   : > { %615 = vmatmul.mubr.f32.gmra.mrb[4].mxu0 %v202_v30  ;;  %636 = vmatmul.mubr.f32.gmra.mrb[4].mxu1 %v209_v31 }
  0x39   : > { %617 = vmatprep.mubr.msk.f32.mxu0 %vm854_vm0, %v855_v6  ;;  %638 = vmatprep.mubr.msk.f32.mxu1 %vm854_vm0, %v855_v6 }
  0x3c   : > { %618 = vmatmul.mubr.f32.gmra.mrb[6].mxu0 %v203_v32  ;;  %639 = vmatmul.mubr.f32.gmra.mrb[6].mxu1 %v210_v33 }
  0x3d   : > { %620 = vmatprep.mubr.msk.f32.mxu0 %vm854_vm0, %v855_v6  ;;  %641 = vmatprep.mubr.msk.f32.mxu1 %vm854_vm0, %v855_v6 }
  0x40   : > { %621 = vmatmul.mubr.f32.gmra.mrb[8].mxu0 %v204_v34  ;;  %642 = vmatmul.mubr.f32.gmra.mrb[8].mxu1 %v211_v35 }
  0x41   : > { %623 = vmatprep.mubr.msk.f32.mxu0 %vm854_vm0, %v855_v6  ;;  %644 = vmatprep.mubr.msk.f32.mxu1 %vm854_vm0, %v855_v6 }
  0x44   : > { %624 = vmatmul.mubr.f32.gmra.mrb[10].mxu0 %v205_v36  ;;  %645 = vmatmul.mubr.f32.gmra.mrb[10].mxu1 %v212_v37 }
  0x45   : > { %626 = vmatprep.mubr.msk.f32.mxu0 %vm854_vm0, %v855_v6 }
  0x48   : > { %627 = vmatmul.mubr.f32.gmra.mrb[12].mxu0 %v206_v38 }
 0x103   : > { %v295_v39 = vpop.f32.mrb[0].mxu0  ;;  %v330_v40 = vpop.f32.mrb[0].mxu1 }
 0x104   : > { %v359_v41 = vmul.f32 0.5, %v295_v39  ;;  %v610_v42 = vpop.f32.mrb[1].mxu0  ;;  %v366_v43 = vmul.f32 0.5, %v330_v40  ;;  %v631_v44 = vpop.f32.mrb[1].mxu1 }
 0x106   : > { %747 = vtanh.f32 %v359_v41 }
 0x107   : > { %749 = vtanh.f32 %v366_v43  ;;  %v300_v45 = vpop.f32.mrb[2].mxu0  ;;  %v335_v46 = vpop.f32.mrb[2].mxu1 }
 0x108   : > { %v360_v47 = vmul.f32 0.5, %v300_v45  ;;  %v613_v48 = vpop.f32.mrb[3].mxu0  ;;  %v367_v49 = vmul.f32 0.5, %v335_v46  ;;  %v634_v50 = vpop.f32.mrb[3].mxu1 }
 0x10a   : > { %751 = vtanh.f32 %v360_v47 }
 0x10b   : > { %753 = vtanh.f32 %v367_v49  ;;  %v305_v51 = vpop.f32.mrb[4].mxu0  ;;  %v340_v52 = vpop.f32.mrb[4].mxu1 }
 0x10c   : > { %v361_v53 = vmul.f32 0.5, %v305_v51  ;;  %v616_v54 = vpop.f32.mrb[5].mxu0  ;;  %v368_v55 = vmul.f32 0.5, %v340_v52  ;;  %v637_v56 = vpop.f32.mrb[5].mxu1 }
 0x10e   : > { %755 = vtanh.f32 %v361_v53 }
 0x10f   : > { %757 = vtanh.f32 %v368_v55  ;;  %v310_v57 = vpop.f32.mrb[6].mxu0  ;;  %v345_v58 = vpop.f32.mrb[6].mxu1 }
 0x110   : > { %v748_v59 = vpop.eup %747  ;;  %v362_v60 = vmul.f32 0.5, %v310_v57  ;;  %v619_v61 = vpop.f32.mrb[7].mxu0  ;;  %v369_v62 = vmul.f32 0.5, %v345_v58 }
 0x111   : > { %v640_v63 = vpop.f32.mrb[7].mxu1  ;;  %v750_v0 = vpop.eup %749  ;;  %v385_v1 = vadd.f32 1.0, %v748_v59 }
 0x112   : > { %v392_v2 = vadd.f32 1.0, %v750_v0  ;;  %759 = vtanh.f32 %v362_v60 }
 0x113   : > { %v398_v3 = vmul.f32 0.5, %v385_v1  ;;  %761 = vtanh.f32 %v369_v62  ;;  %v315_v4 = vpop.f32.mrb[8].mxu0  ;;  %v350_v5 = vpop.f32.mrb[8].mxu1 }
 0x114   : > { %v752_v6 = vpop.eup %751  ;;  %v405_v7 = vmul.f32 0.5, %v392_v2  ;;  %v363_v8 = vmul.f32 0.5, %v315_v4  ;;  %v622_v9 = vpop.f32.mrb[9].mxu0  ;;  %v370_v10 = vmul.f32 0.5, %v350_v5 }
 0x115   : > { %v643_v11 = vpop.f32.mrb[9].mxu1  ;;  %v754_v12 = vpop.eup %753  ;;  %411 = vst [vmem:[%s1029_s28] sm:$0xff] %v398_v3  ;;  %v386_v13 = vadd.f32 1.0, %v752_v6 }
 0x116   : > { %418 = vst [vmem:[%s1029_s28 + $0x38] sm:$0xff] %v405_v7  ;;  %v393_v14 = vadd.f32 1.0, %v754_v12  ;;  %763 = vtanh.f32 %v363_v8 }
 0x117   : > { %v399_v15 = vmul.f32 0.5, %v386_v13  ;;  %765 = vtanh.f32 %v370_v10  ;;  %v320_v16 = vpop.f32.mrb[10].mxu0  ;;  %v355_v17 = vpop.f32.mrb[10].mxu1 }
 0x118   : > { %v756_v18 = vpop.eup %755  ;;  %v406_v19 = vmul.f32 0.5, %v393_v14  ;;  %v364_v20 = vmul.f32 0.5, %v320_v16  ;;  %v625_v21 = vpop.f32.mrb[11].mxu0  ;;  %v371_v22 = vmul.f32 0.5, %v355_v17 }
 0x119   : > { %v646_v23 = vpop.f32.mrb[11].mxu1  ;;  %v758_v24 = vpop.eup %757  ;;  %412 = vst [vmem:[%s1029_s28 + $0x8] sm:$0xff] %v399_v15  ;;  %v387_v25 = vadd.f32 1.0, %v756_v18 }
 0x11a   : > { %419 = vst [vmem:[%s1029_s28 + $0x40] sm:$0xff] %v406_v19  ;;  %v394_v26 = vadd.f32 1.0, %v758_v24  ;;  %767 = vtanh.f32 %v364_v20 }
 0x11b   : > { %v400_v27 = vmul.f32 0.5, %v387_v25  ;;  %769 = vtanh.f32 %v371_v22  ;;  %v325_v28 = vpop.f32.mrb[12].mxu0 }
 0x11c   : > { %v760_v29 = vpop.eup %759  ;;  %v407_v30 = vmul.f32 0.5, %v394_v26  ;;  %v365_v31 = vmul.f32 0.5, %v325_v28  ;;  %v628_v32 = vpop.f32.mrb[13].mxu0 }
 0x11d   : > { %v762_v33 = vpop.eup %761  ;;  %413 = vst [vmem:[%s1029_s28 + $0x10] sm:$0xff] %v400_v27  ;;  %v388_v34 = vadd.f32 1.0, %v760_v29 }
 0x11e   : > { %420 = vst [vmem:[%s1029_s28 + $0x48] sm:$0xff] %v407_v30  ;;  %v395_v35 = vadd.f32 1.0, %v762_v33  ;;  %771 = vtanh.f32 %v365_v31 }
 0x11f   : > { %v401_v36 = vmul.f32 0.5, %v388_v34 }
 0x120   : > { %v764_v37 = vpop.eup %763  ;;  %v408_v38 = vmul.f32 0.5, %v395_v35 }
 0x121   : > { %v766_v39 = vpop.eup %765  ;;  %414 = vst [vmem:[%s1029_s28 + $0x18] sm:$0xff] %v401_v36  ;;  %v389_v40 = vadd.f32 1.0, %v764_v37 }
 0x122   : > { %421 = vst [vmem:[%s1029_s28 + $0x50] sm:$0xff] %v408_v38  ;;  %v396_v41 = vadd.f32 1.0, %v766_v39 }
 0x123   : > { %v402_v42 = vmul.f32 0.5, %v389_v40 }
 0x124   : > { %v768_v43 = vpop.eup %767  ;;  %v409_v44 = vmul.f32 0.5, %v396_v41 }
 0x125   : > { %v770_v45 = vpop.eup %769  ;;  %415 = vst [vmem:[%s1029_s28 + $0x20] sm:$0xff] %v402_v42  ;;  %v390_v46 = vadd.f32 1.0, %v768_v43 }
 0x126   : > { %422 = vst [vmem:[%s1029_s28 + $0x58] sm:$0xff] %v409_v44  ;;  %v397_v47 = vadd.f32 1.0, %v770_v45 }
 0x127   : > { %v403_v48 = vmul.f32 0.5, %v390_v46  ;;  %431 = sbr.rel (!%p914_p4) target bundleno = 330 (0x14a), region = 32 }
 0x128   : > { %v772_v49 = vpop.eup %771  ;;  %v410_v50 = vmul.f32 0.5, %v397_v47 }
 0x129   : > { %416 = vst [vmem:[%s1029_s28 + $0x28] sm:$0xff] %v403_v48  ;;  %v391_v51 = vadd.f32 1.0, %v772_v49 }
 0x12a   : > { %423 = vst [vmem:[%s1029_s28 + $0x60] sm:$0xff] %v410_v50 }
 0x12b   : > { %v404_v52 = vmul.f32 0.5, %v391_v51 }
 0x12d   : > { %417 = vst [vmem:[%s1029_s28 + $0x30] sm:$0xff] %v404_v52 }
 0x12e   : > { %s1125_s30 = smov (!%p434_p12, %s433_s30), 13 }
 0x12f   : > { %s1051_s3 = sshll.u32 %s1125_s30, 7 }
 0x130   : > { %s438_s4 = ssub.s32 1664, %s1051_s3 }
 0x131   : > { %439 = vsyncadd %s1046_s29, %s438_s4  ;;  %p540_p13 = scmp.ne.s32.totalorder %s1051_s3, 0  ;;  %s546_s5 = smul.u32 1664, %s843_s12 }
 0x132   : > { %s445_s6 = sshll.u32 %s1029_s28, 4  ;;  %s856_s15 = smov [#allocation2]   ;;  %s1063_s6 = int_to_ptr.vmem [resolvable:$true] %s445_s6 }
 0x133   : > { %s1061_s8 = scalar_lea.hbm %s1114_s2, %s546_s5  ;;  %s773_s25 = scalar_lea.vmem %s1063_s6, %s1051_s3 }
 0x134   : > { %p774_p0 = scmp.ne.s32.totalorder %s1063_s6, %s773_s25  ;;  %s777_s16 = sshll.u32 %s856_s15, 4  ;;  %s778_s16 = int_to_ptr.vmem [resolvable:$false] %s777_s16 }
 0x135   : > { %s779_s12 = scalar_lea.vmem %s778_s16, 3328  ;;  %p780_p3 = scmp.lt.s32.totalorder %s1063_s6, %s778_s16 }
 0x136   : > { %p775_p1 = pnand %p774_p0, %p540_p13  ;;  %p781_p4 = scmp.lt.s32.totalorder %s779_s12, %s773_s25 }
 0x138   : > { %p776_p2 = pneg %p775_p1  ;;  %p782_p5 = por %p781_p4, %p780_p3 }
 0x13a   : > { %p783_p6 = pnand %p782_p5, %p776_p2 }
 0x13c   : > { %786 = shalt.err (!%p783_p6)
}
 0x13d   : > { %s787_s18 = scalar_lea.hbm %s1061_s8, %s1051_s3  ;;  %s791_s24 = scalar_lea.hbm %s1114_s2, 3200 }
 0x13e   : > { %p788_p7 = scmp.ne.s32.totalorder %s1061_s8, %s787_s18  ;;  %p792_p11 = scmp.lt.u32.totalorder %s1061_s8, %s1114_s2 }
 0x13f   : > { %p793_p12 = scmp.lt.u32.totalorder %s791_s24, %s787_s18  ;;  %p795_p1 = scmp.lt.u32.totalorder %s787_s18, %s1061_s8 }
 0x140   : > { %p789_p9 = pnand %p788_p7, %p540_p13 }
 0x141   : > { %p794_p0 = por %p793_p12, %p792_p11 }
 0x142   : > { %p790_p10 = pneg %p789_p9 }
 0x143   : > { %p796_p2 = por %p795_p1, %p794_p0 }
 0x145   : > { %p797_p3 = pnand %p796_p2, %p790_p10 }
 0x147   : > { %800 = shalt.err (!%p797_p3)
}
 0x148   : > { %s857_s28 = smov 128   ;;  %s858_s30 = smov 8  }
 0x149   : > { %451 = dma.vmem_to_hbm [thread:$0]  (%p540_p13), %s1063_s6, %s1051_s3, %s1061_s8, %s1046_s29, %s857_s28, %s857_s28, %s858_s30  }
 0x14a PF: > { %p693_p4 = scmp.ge.s32.totalorder %s851_s14, 2  ;;  %s460_s4 = sand.u32 1, %s831_s9  }
 0x14b   : > { %s461_s5 = scalar_lea.sflag [#allocation3], %s460_s4 }
 0x14c   : > { %p690_p5 = pnand %p693_p4, %p921_p8 }
 0x14e   : > { %826 = dma.done.wait (!%p690_p5), %s461_s5, 1664  }
 0x14f   : > { %828 = vsyncadd (!%p690_p5), %s461_s5, 4294965632  ;;  %s15_s14 = sadd.s32 1, %s851_s14   ;;  %s1117_s9 = smov %s835_s10 }
 0x150   : > { %p12_p6 = scmp.ge.s32.totalorder %s15_s14, 4   ;;  %s1118_s10 = smov %s839_s11 }
 0x151   : > { %s1119_s11 = smov %s927_s22  ;;  %s1120_s12 = smov %s847_s13 }
 0x152   : > { %s1121_s13 = smov %s1123_s17  ;;  %14 = sbr.rel (!%p12_p6) target bundleno = 4 (0x4), region = 66 }
 0x159   :  { %466 = vsyncpa [#allocation3], 1 }
 0x15a   :  { %468 = vsyncpa [#allocation3 + $0x1], 1 }

</bundles_post_ra>
